<compile_context>
chip_gen: v7x
topology: tpu7x:2x2x1
jax: 0.10.0
libtpu: 0.0.40
codegen_flags: <defaults>
</compile_context>

<pallas_src>
import functools

import jax
import jax.numpy as jnp
from jax import lax
from jax.experimental import pallas as pl
from jax.experimental.pallas import tpu as pltpu


def _gradient_loss_kernel(a_ref, px_ref, py_ref, *, nc_total):
    """One grid step over a (TILE_NC, H, W) channel block.

    px_ref: (1, W-1) f32 -- sum over this block's valid channels + rows of |dx|.
    py_ref: (1, W)   f32 -- sum over this block's valid channels + rows of |dy|.
    """
    tile = a_ref.shape[0]
    # Number of channels still valid in this (possibly ragged last) block.
    valid = jnp.minimum(tile, nc_total - pl.program_id(0) * tile)

    px_ref[...] = jnp.zeros_like(px_ref)
    py_ref[...] = jnp.zeros_like(py_ref)

    def body(c, carry):
        @pl.when(c < valid)
        def _():
            slab = a_ref[c]                               # (H, W), input dtype
            dx = jnp.abs(slab[:, :-1] - slab[:, 1:])      # (H, W-1)
            dy = jnp.abs(slab[:-1, :] - slab[1:, :])      # (H-1, W)
            # Row reduction with f32 accumulation; diffs stay in input dtype
            # and the widening cast rides the reduction add.
            px_ref[...] += jnp.sum(dx, axis=0, keepdims=True, dtype=jnp.float32)
            py_ref[...] += jnp.sum(dy, axis=0, keepdims=True, dtype=jnp.float32)
        return carry

    lax.fori_loop(0, tile, body, 0, unroll=(tile <= 8))


def _tpu_budgets():
    """(input-block byte budget, scoped VMEM limit) for this TPU generation."""
    vmem_cap = None
    try:
        vmem_cap = getattr(pltpu.get_tpu_info(), "vmem_capacity_bytes", None)
    except Exception:  # interpret mode / unknown backend / older jax
        vmem_cap = None
    if vmem_cap is not None and vmem_cap > 64 * 1024 * 1024:
        # v5e / v6e: 128 MiB physical VMEM -> bigger blocks amortize per-step cost.
        return 8 * 1024 * 1024, 64 * 1024 * 1024
    # v7x-like (64 MiB per TensorCore) or unknown: stay conservative.
    return 3 * 1024 * 1024, 32 * 1024 * 1024


def _pick_tile_nc(nc: int, per_channel_bytes: int, budget_bytes: int) -> int:
    """Channels per block: near the byte budget, but capped so the 'parallel'
    grid has >= min(nc, 4) steps (keeps both v7x TensorCores busy)."""
    by_budget = max(1, budget_bytes // max(1, per_channel_bytes))
    by_parallel = max(1, pl.cdiv(nc, min(nc, 4)))
    return max(1, min(nc, by_budget, by_parallel))


def _gradient_loss_reference(a: jax.Array) -> jax.Array:
    """Pure-JAX reference / fallback path (f32 accumulation)."""
    a32 = a.astype(jnp.float32)
    gx = jnp.abs(a32[:, :, :, :-1] - a32[:, :, :, 1:])
    gy = jnp.abs(a32[:, :, :-1, :] - a32[:, :, 1:, :])
    return jnp.mean(gx) + jnp.mean(gy)


@jax.jit
def gradient_loss(a: jax.Array) -> jax.Array:
    """a: (N, C, H, W) -> scalar f32, matching GradientLoss.forward."""
    n, c, h, w = a.shape
    if h < 2 or w < 2:
        # torch.mean of an empty tensor is NaN; match that behaviour.
        return jnp.float32(jnp.nan)

    nc = n * c
    x = a.reshape(nc, h, w)
    budget_bytes, vmem_limit = _tpu_budgets()
    per_channel_bytes = h * w * x.dtype.itemsize

    # TODO(synk): tile H with a 1-row halo instead of falling back, so very
    # large per-channel images also run through the Pallas path.
    if per_channel_bytes * 6 > vmem_limit:
        return _gradient_loss_reference(a)

    tile_nc = _pick_tile_nc(nc, per_channel_bytes, budget_bytes)
    num_blocks = pl.cdiv(nc, tile_nc)

    kernel = functools.partial(_gradient_loss_kernel, nc_total=nc)

    out_shape = (
        jax.ShapeDtypeStruct((num_blocks, 1, w - 1), jnp.float32),  # |dx| row sums
        jax.ShapeDtypeStruct((num_blocks, 1, w), jnp.float32),      # |dy| row sums
    )
    in_bytes = nc * h * w * x.dtype.itemsize
    out_bytes = num_blocks * (2 * w - 1) * 4
    cost = pl.CostEstimate(flops=6 * nc * h * w, transcendentals=0,
                           bytes_accessed=in_bytes + out_bytes)

    px, py = pl.pallas_call(
        kernel,
        out_shape=out_shape,
        grid_spec=pltpu.PrefetchScalarGridSpec(
            num_scalar_prefetch=0,
            grid=(num_blocks,),
            in_specs=[pl.BlockSpec((tile_nc, h, w), lambda i: (i, 0, 0))],
            out_specs=(
                pl.BlockSpec((None, 1, w - 1), lambda i: (i, 0, 0)),
                pl.BlockSpec((None, 1, w), lambda i: (i, 0, 0)),
            ),
        ),
        compiler_params=pltpu.CompilerParams(
            dimension_semantics=("parallel",),
            vmem_limit_bytes=vmem_limit,
        ),
        cost_estimate=cost,
    )(x)

    # Tiny final reduction + exact PyTorch mean scaling, in f32.
    mean_x = jnp.sum(px) * (1.0 / float(nc * h * (w - 1)))
    mean_y = jnp.sum(py) * (1.0 / float(nc * (h - 1) * w))
    return mean_x + mean_y


if __name__ == "__main__":
    key = jax.random.PRNGKey(0)
    a = jax.random.normal(key, (2, 4, 16, 16), dtype=jnp.float32)

    loss = jax.block_until_ready(gradient_loss(a))
    ref = jax.block_until_ready(_gradient_loss_reference(a))
    assert jnp.allclose(loss, ref, atol=1e-5, rtol=1e-5), (loss, ref)

    # Exercise the ragged-tail / odd-spatial path (N*C=5 not a tile multiple).
    b = jax.random.normal(jax.random.PRNGKey(0), (1, 5, 17, 23), dtype=jnp.float32)
    loss_b = jax.block_until_ready(gradient_loss(b))
    ref_b = jax.block_until_ready(_gradient_loss_reference(b))
    assert jnp.allclose(loss_b, ref_b, atol=1e-5, rtol=1e-5), (loss_b, ref_b)

    print("KERNEL_OK")
</pallas_src>

<mosaic_0001>
module attributes {stable_mosaic.version = 11 : i64} {
  func.func @_gradient_loss_kernel(%arg0: i32, %arg1: memref<2x16x16xf32, #tpu.memory_space<vmem>>, %arg2: memref<1x1x15xf32, #tpu.memory_space<vmem>>, %arg3: memref<1x1x16xf32, #tpu.memory_space<vmem>>) attributes {dimension_semantics = [#tpu.dimension_semantics<parallel>], iteration_bounds = array<i64: 4>, scalar_prefetch = 0 : i64, scratch_operands = 0 : i64, tpu.core_type = #tpu.core_type<tc>, window_params = [{transform_indices = @transform_0, window_bounds = array<i64: 2, 16, 16>}, {transform_indices = @transform_1, window_bounds = array<i64: 1, 1, 15>}, {transform_indices = @transform_2, window_bounds = array<i64: 1, 1, 16>}]} {
    %c2_i32 = arith.constant 2 : i32
    %0 = arith.muli %arg0, %c2_i32 : i32
    %c8_i32 = arith.constant 8 : i32
    %1 = arith.subi %c8_i32, %0 : i32
    %c2_i32_0 = arith.constant 2 : i32
    %2 = arith.minsi %c2_i32_0, %1 : i32
    %cst = arith.constant 0.000000e+00 : f32
    %3 = vector.broadcast %cst : f32 to vector<1x15xf32>
    %c0 = arith.constant 0 : index
    %c0_1 = arith.constant 0 : index
    %c0_2 = arith.constant 0 : index
    %4 = vector.load %arg2[%c0, %c0_1, %c0_2] : memref<1x1x15xf32, #tpu.memory_space<vmem>>, vector<1x1x15xf32>
    %5 = vector.shape_cast %4 : vector<1x1x15xf32> to vector<1x15xf32>
    %6 = vector.shape_cast %3 : vector<1x15xf32> to vector<1x1x15xf32>
    tpu.vector_store %arg2[%c0, %c0_1, %c0_2], %6 {strides = array<i32>} : memref<1x1x15xf32, #tpu.memory_space<vmem>>, vector<1x1x15xf32>,
    %cst_3 = arith.constant 0.000000e+00 : f32
    %7 = vector.broadcast %cst_3 : f32 to vector<1x16xf32>
    %c0_4 = arith.constant 0 : index
    %c0_5 = arith.constant 0 : index
    %c0_6 = arith.constant 0 : index
    %8 = vector.load %arg3[%c0_4, %c0_5, %c0_6] : memref<1x1x16xf32, #tpu.memory_space<vmem>>, vector<1x1x16xf32>
    %9 = vector.shape_cast %8 : vector<1x1x16xf32> to vector<1x16xf32>
    %10 = vector.shape_cast %7 : vector<1x16xf32> to vector<1x1x16xf32>
    tpu.vector_store %arg3[%c0_4, %c0_5, %c0_6], %10 {strides = array<i32>} : memref<1x1x16xf32, #tpu.memory_space<vmem>>, vector<1x1x16xf32>,
    %c0_i32 = arith.constant 0 : i32
    %11 = arith.cmpi slt, %c0_i32, %2 : i32
    %12 = arith.extui %11 : i1 to i32
    %c0_i32_7 = arith.constant 0 : i32
    %13 = arith.cmpi ne, %12, %c0_i32_7 : i32
    scf.if %13 {
      %17 = arith.index_cast %c0_i32 : i32 to index
      %c0_10 = arith.constant 0 : index
      %c0_11 = arith.constant 0 : index
      %18 = vector.load %arg1[%17, %c0_10, %c0_11] : memref<2x16x16xf32, #tpu.memory_space<vmem>>, vector<1x16x16xf32>
      %19 = vector.shape_cast %18 : vector<1x16x16xf32> to vector<16x16xf32>
      %20 = vector.extract_strided_slice %19 {offsets = [0, 0], sizes = [16, 15], strides = [1, 1]} : vector<16x16xf32> to vector<16x15xf32>
      %21 = vector.extract_strided_slice %19 {offsets = [0, 1], sizes = [16, 15], strides = [1, 1]} : vector<16x16xf32> to vector<16x15xf32>
      %22 = arith.subf %20, %21 : vector<16x15xf32>
      %23 = math.absf %22 : vector<16x15xf32>
      %24 = vector.extract_strided_slice %19 {offsets = [0, 0], sizes = [15, 16], strides = [1, 1]} : vector<16x16xf32> to vector<15x16xf32>
      %25 = vector.extract_strided_slice %19 {offsets = [1, 0], sizes = [15, 16], strides = [1, 1]} : vector<16x16xf32> to vector<15x16xf32>
      %26 = arith.subf %24, %25 : vector<15x16xf32>
      %27 = math.absf %26 : vector<15x16xf32>
      %c0_12 = arith.constant 0 : index
      %c0_13 = arith.constant 0 : index
      %c0_14 = arith.constant 0 : index
      %28 = vector.load %arg2[%c0_12, %c0_13, %c0_14] : memref<1x1x15xf32, #tpu.memory_space<vmem>>, vector<1x1x15xf32>
      %29 = vector.shape_cast %28 : vector<1x1x15xf32> to vector<1x15xf32>
      %cst_15 = arith.constant dense<0.000000e+00> : vector<15xf32>
      %30 = vector.multi_reduction <add>, %23, %cst_15 [0] : vector<16x15xf32> to vector<15xf32>
      %31 = vector.shape_cast %30 : vector<15xf32> to vector<1x15xf32>
      %32 = arith.addf %29, %31 : vector<1x15xf32>
      %c0_16 = arith.constant 0 : index
      %c0_17 = arith.constant 0 : index
      %c0_18 = arith.constant 0 : index
      %33 = vector.load %arg2[%c0_16, %c0_17, %c0_18] : memref<1x1x15xf32, #tpu.memory_space<vmem>>, vector<1x1x15xf32>
      %34 = vector.shape_cast %33 : vector<1x1x15xf32> to vector<1x15xf32>
      %35 = vector.shape_cast %32 : vector<1x15xf32> to vector<1x1x15xf32>
      tpu.vector_store %arg2[%c0_16, %c0_17, %c0_18], %35 {strides = array<i32>} : memref<1x1x15xf32, #tpu.memory_space<vmem>>, vector<1x1x15xf32>,
      %c0_19 = arith.constant 0 : index
      %c0_20 = arith.constant 0 : index
      %c0_21 = arith.constant 0 : index
      %36 = vector.load %arg3[%c0_19, %c0_20, %c0_21] : memref<1x1x16xf32, #tpu.memory_space<vmem>>, vector<1x1x16xf32>
      %37 = vector.shape_cast %36 : vector<1x1x16xf32> to vector<1x16xf32>
      %cst_22 = arith.constant dense<0.000000e+00> : vector<16xf32>
      %38 = vector.multi_reduction <add>, %27, %cst_22 [0] : vector<15x16xf32> to vector<16xf32>
      %39 = vector.shape_cast %38 : vector<16xf32> to vector<1x16xf32>
      %40 = arith.addf %37, %39 : vector<1x16xf32>
      %c0_23 = arith.constant 0 : index
      %c0_24 = arith.constant 0 : index
      %c0_25 = arith.constant 0 : index
      %41 = vector.load %arg3[%c0_23, %c0_24, %c0_25] : memref<1x1x16xf32, #tpu.memory_space<vmem>>, vector<1x1x16xf32>
      %42 = vector.shape_cast %41 : vector<1x1x16xf32> to vector<1x16xf32>
      %43 = vector.shape_cast %40 : vector<1x16xf32> to vector<1x1x16xf32>
      tpu.vector_store %arg3[%c0_23, %c0_24, %c0_25], %43 {strides = array<i32>} : memref<1x1x16xf32, #tpu.memory_space<vmem>>, vector<1x1x16xf32>,
    } else {
    }
    %c1_i32 = arith.constant 1 : i32
    %14 = arith.cmpi slt, %c1_i32, %2 : i32
    %15 = arith.extui %14 : i1 to i32
    %c0_i32_8 = arith.constant 0 : i32
    %16 = arith.cmpi ne, %15, %c0_i32_8 : i32
    scf.if %16 {
      %17 = arith.index_cast %c1_i32 : i32 to index
      %c0_10 = arith.constant 0 : index
      %c0_11 = arith.constant 0 : index
      %18 = vector.load %arg1[%17, %c0_10, %c0_11] : memref<2x16x16xf32, #tpu.memory_space<vmem>>, vector<1x16x16xf32>
      %19 = vector.shape_cast %18 : vector<1x16x16xf32> to vector<16x16xf32>
      %20 = vector.extract_strided_slice %19 {offsets = [0, 0], sizes = [16, 15], strides = [1, 1]} : vector<16x16xf32> to vector<16x15xf32>
      %21 = vector.extract_strided_slice %19 {offsets = [0, 1], sizes = [16, 15], strides = [1, 1]} : vector<16x16xf32> to vector<16x15xf32>
      %22 = arith.subf %20, %21 : vector<16x15xf32>
      %23 = math.absf %22 : vector<16x15xf32>
      %24 = vector.extract_strided_slice %19 {offsets = [0, 0], sizes = [15, 16], strides = [1, 1]} : vector<16x16xf32> to vector<15x16xf32>
      %25 = vector.extract_strided_slice %19 {offsets = [1, 0], sizes = [15, 16], strides = [1, 1]} : vector<16x16xf32> to vector<15x16xf32>
      %26 = arith.subf %24, %25 : vector<15x16xf32>
      %27 = math.absf %26 : vector<15x16xf32>
      %c0_12 = arith.constant 0 : index
      %c0_13 = arith.constant 0 : index
      %c0_14 = arith.constant 0 : index
      %28 = vector.load %arg2[%c0_12, %c0_13, %c0_14] : memref<1x1x15xf32, #tpu.memory_space<vmem>>, vector<1x1x15xf32>
      %29 = vector.shape_cast %28 : vector<1x1x15xf32> to vector<1x15xf32>
      %cst_15 = arith.constant dense<0.000000e+00> : vector<15xf32>
      %30 = vector.multi_reduction <add>, %23, %cst_15 [0] : vector<16x15xf32> to vector<15xf32>
      %31 = vector.shape_cast %30 : vector<15xf32> to vector<1x15xf32>
      %32 = arith.addf %29, %31 : vector<1x15xf32>
      %c0_16 = arith.constant 0 : index
      %c0_17 = arith.constant 0 : index
      %c0_18 = arith.constant 0 : index
      %33 = vector.load %arg2[%c0_16, %c0_17, %c0_18] : memref<1x1x15xf32, #tpu.memory_space<vmem>>, vector<1x1x15xf32>
      %34 = vector.shape_cast %33 : vector<1x1x15xf32> to vector<1x15xf32>
      %35 = vector.shape_cast %32 : vector<1x15xf32> to vector<1x1x15xf32>
      tpu.vector_store %arg2[%c0_16, %c0_17, %c0_18], %35 {strides = array<i32>} : memref<1x1x15xf32, #tpu.memory_space<vmem>>, vector<1x1x15xf32>,
      %c0_19 = arith.constant 0 : index
      %c0_20 = arith.constant 0 : index
      %c0_21 = arith.constant 0 : index
      %36 = vector.load %arg3[%c0_19, %c0_20, %c0_21] : memref<1x1x16xf32, #tpu.memory_space<vmem>>, vector<1x1x16xf32>
      %37 = vector.shape_cast %36 : vector<1x1x16xf32> to vector<1x16xf32>
      %cst_22 = arith.constant dense<0.000000e+00> : vector<16xf32>
      %38 = vector.multi_reduction <add>, %27, %cst_22 [0] : vector<15x16xf32> to vector<16xf32>
      %39 = vector.shape_cast %38 : vector<16xf32> to vector<1x16xf32>
      %40 = arith.addf %37, %39 : vector<1x16xf32>
      %c0_23 = arith.constant 0 : index
      %c0_24 = arith.constant 0 : index
      %c0_25 = arith.constant 0 : index
      %41 = vector.load %arg3[%c0_23, %c0_24, %c0_25] : memref<1x1x16xf32, #tpu.memory_space<vmem>>, vector<1x1x16xf32>
      %42 = vector.shape_cast %41 : vector<1x1x16xf32> to vector<1x16xf32>
      %43 = vector.shape_cast %40 : vector<1x16xf32> to vector<1x1x16xf32>
      tpu.vector_store %arg3[%c0_23, %c0_24, %c0_25], %43 {strides = array<i32>} : memref<1x1x16xf32, #tpu.memory_space<vmem>>, vector<1x1x16xf32>,
    } else {
    }
    %c2_i32_9 = arith.constant 2 : i32
    return
  }
  func.func @transform_0(%arg0: i32) -> (i32, i32, i32) {
    %c0_i32 = arith.constant 0 : i32
    %c0_i32_0 = arith.constant 0 : i32
    %c0_i32_1 = arith.constant 0 : i32
    return %arg0, %c0_i32, %c0_i32_0 : i32, i32, i32
  }
  func.func @transform_1(%arg0: i32) -> (i32, i32, i32) {
    %c0_i32 = arith.constant 0 : i32
    %c0_i32_0 = arith.constant 0 : i32
    %c0_i32_1 = arith.constant 0 : i32
    return %arg0, %c0_i32, %c0_i32_0 : i32, i32, i32
  }
  func.func @transform_2(%arg0: i32) -> (i32, i32, i32) {
    %c0_i32 = arith.constant 0 : i32
    %c0_i32_0 = arith.constant 0 : i32
    %c0_i32_1 = arith.constant 0 : i32
    return %arg0, %c0_i32, %c0_i32_0 : i32, i32, i32
  }
}

</mosaic_0001>

<bundles_post_ra>
// kernel: gradient_loss.1
= control target key start
LH: loop header
LB: loop body
LE: loop exit
PB: predicated region body
PF: predicated region fallthrough
CT: control target
= control target key end

     0   :  { %8 = vsyncpa [#allocation3], 0  ;;  %s673_s0 = inlined_call_operand.hbm [shape: f32[8,16,16], index: 0, kind: input, shape index: {}]   ;;  %s674_s1 = inlined_call_operand.vmem [shape: f32[4,1,15], index: 1, kind: output, shape index: {0}]   ;;  %s675_s2 = inlined_call_operand.vmem [shape: f32[4,1,16], index: 2, kind: output, shape index: {1}]  }
   0x1   :  { %10 = vsyncpa [#allocation3 + $0x1], 0  ;;  %s531_s9 = smov 0   ;;  %s533_s10 = smov 0  }
   0x2   :  { %s535_s11 = smov 0   ;;  %s537_s12 = smov 0  }
   0x3 LB: > { %s550_s13 = sadd.s32 4294967295, %s508_s12   ;;  %s553_s14 = sadd.s32 1, %s508_s12   ;;  %s508_s12 = sphi %s537_s12, %s682_s12   ;;  %s504_s11 = sphi %s535_s11, %s681_s11   ;;  %s500_s10 = sphi %s533_s10, %s680_s10   ;;  %s496_s9 = sphi %s531_s9, %s679_s9  }
   0x4   : > { %s20_s15 = ssub.s32 %s508_s12, %s553_s14  ;;  %s23_s16 = sadd.s32 1, %s504_s11 }
   0x5   : > { %p21_p0 = scmp.eq.s32.totalorder %s20_s15, 0  ;;  %p30_p1 = scmp.ne.s32.totalorder %s504_s11, %s500_s10 }
   0x6   : > { %p31_p2 = scmp.eq.s32.totalorder %s508_s12, 0  ;;  %p36_p3 = scmp.ne.s32.totalorder %s500_s10, %s496_s9 }
   0x7   : > { %s563_s17 = scalar_select %p21_p0, %s504_s11, %s23_s16  }
   0x8   : > { %p32_p4 = por %p31_p2, %p30_p1  ;;  %p37_p5 = scmp.eq.s32.totalorder %s550_s13, 0 }
   0x9   : > { %p406_p6 = scmp.lt.s32.totalorder %s508_s12, 4  ;;  %s112_s19 = sand.u32 1, %s504_s11  }
   0xa   : > { %p567_p7 = por %p37_p5, %p36_p3  ;;  %s377_s20 = sshll.u32 %s112_s19, 5 }
   0xb   : > { %s397_s21 = sshll.u32 %s508_s12, 9  ;;  %s116_s25 = scalar_lea.vmem [#allocation2], %s377_s20 }
   0xc   : > { %s576_s24 = scalar_lea.hbm %s673_s0, %s397_s21  ;;  %s124_s26 = sshll.u32 %s116_s25, 4  ;;  %s578_s26 = int_to_ptr.vmem [resolvable:$true] %s124_s26 }
   0xd   : > { %p580_p8 = pnand %p406_p6, %p32_p4  ;;  %s585_s28 = scalar_lea.sflag [#allocation3], %s112_s19 }
   0xe   : > { %s444_s29 = scalar_lea.hbm %s576_s24, 512  ;;  %s449_s4 = scalar_lea.hbm %s673_s0, 2048 }
   0xf   : > { %p445_p10 = scmp.ne.s32.totalorder %s576_s24, %s444_s29  ;;  %p446_p11 = pneg %p580_p8 }
  0x10   : > { %p450_p0 = scmp.lt.u32.totalorder %s576_s24, %s673_s0  ;;  %p451_p1 = scmp.lt.u32.totalorder %s449_s4, %s444_s29 }
  0x11   : > { %p447_p12 = pnand %p446_p11, %p445_p10  ;;  %p453_p3 = scmp.lt.u32.totalorder %s444_s29, %s576_s24 }
  0x12   : > { %p452_p2 = por %p451_p1, %p450_p0 }
  0x13   : > { %p448_p13 = pneg %p447_p12 }
  0x14   : > { %p454_p4 = por %p453_p3, %p452_p2 }
  0x16   : > { %p455_p5 = pnand %p454_p4, %p448_p13 }
  0x18   : > { %458 = shalt.err (!%p455_p5)
}
  0x19   : > { %s459_s7 = scalar_lea.vmem %s578_s26, 512  ;;  %s510_s8 = smov [#allocation2]  }
  0x1a   : > { %p460_p6 = scmp.ne.s32.totalorder %s578_s26, %s459_s7  ;;  %s464_s9 = sshll.u32 %s510_s8, 4  ;;  %s465_s9 = int_to_ptr.vmem [resolvable:$false] %s464_s9 }
  0x1b   : > { %s466_s15 = scalar_lea.vmem %s465_s9, 1024  ;;  %p467_p9 = scmp.lt.s32.totalorder %s578_s26, %s465_s9 }
  0x1c   : > { %p462_p10 = pnand %p460_p6, %p446_p11  ;;  %p468_p0 = scmp.lt.s32.totalorder %s466_s15, %s459_s7 }
  0x1e   : > { %p463_p12 = pneg %p462_p10  ;;  %p469_p1 = por %p468_p0, %p467_p9 }
  0x20   : > { %p470_p2 = pnand %p469_p1, %p463_p12 }
  0x22   : > { %473 = shalt.err (!%p470_p2)
}
  0x23   : > { %s511_s16 = smov 128   ;;  %s512_s19 = smov 8  }
  0x24   : > { %405 = dma.hbm_to_vmem [thread:$0]  (!%p580_p8), %s576_s24, 512, %s578_s26, %s585_s28, %s511_s16, %s511_s16, %s512_s19  }
  0x25   : > { %p132_p11 = scmp.lt.s32.totalorder %s508_s12, 5  ;;  %p678_p13 = scmp.ge.s32.totalorder %s508_s12, 1 }
  0x27   : > { %p133_p3 = pnand %p678_p13, %p132_p11 }
  0x28   : > { %s138_s20 = sand.u32 (!%p133_p3), 1, %s500_s10  }
  0x29   : > { %136 = sbr.rel (%p133_p3) target bundleno = 338 (0x152), region = 24  ;;  %s382_s21 = sshll.u32 (!%p133_p3), %s138_s20, 5 }
  0x2a   : > { %s139_s22 = scalar_lea.sflag (!%p133_p3), [#allocation3], %s138_s20  ;;  %s617_s23 = scalar_lea.vmem (!%p133_p3), [#allocation2], %s382_s21 }
  0x30   : > { %491 = dma.done.wait (%p567_p7), %s139_s22, 512  }
  0x31   : > { %493 = vsyncadd (%p567_p7), %s139_s22, 4294966784  ;;  %p165_p8 = scmp.lt.s32.totalorder %s550_s13, 3  ;;  %s383_s24 = sshll.u32 %s550_s13, 1  ;;  %vm175_vm0 = vcmask 114688   ;;  %vm177_vm1 = vcmask 122880   ;;  %v513_v0 = vmov 0.0  }
  0x32   : > { %s625_s12 = ssub.s32 8, %s383_s24 }
  0x33   : > { %s684_s13 = smov (!%p165_p8, %s550_s13), 3  ;;  %p384_p9 = scmp.gt.s32.totalorder %s625_s12, 0 }
  0x34   : > { %s632_s27 = scalar_lea.vmem %s674_s1, %s684_s13  ;;  %s637_s29 = scalar_lea.vmem %s675_s2, %s684_s13  ;;  %v183_v1 = vld [vmem:[%s617_s23] sm:$0xff] (%p384_p9)  ;;  %v184_v2 = vld [vmem:[%s617_s23 + $0x8] sm:$0xff] (%p384_p9)  ;;  %vm197_vm2 = vcmask (%p384_p9), 1046528   ;;  %vm223_vm3 = vcmask (%p384_p9), 129024   ;;  %vm221_vm4 = vcmask (%p384_p9), 130048   ;;  %vm208_vm5 = vcmask (%p384_p9), 121856  }
  0x35   : > { %176 = vst.msk [vmem:[%s632_s27] sm:$0x1] %vm175_vm0, %v513_v0  ;;  %182 = sbr.rel (!%p384_p9) target bundleno = 195 (0xc3), region = 32  ;;  %s514_s30 = smov (%p384_p9), 127   ;;  %v198_v3 = vrot.slane (%p384_p9), %v183_v1, 1  ;;  %v199_v4 = vrot.slane (%p384_p9), %v184_v2, 1 }
  0x36   : > { %178 = vst.msk [vmem:[%s637_s29] sm:$0x1] %vm177_vm1, %v513_v0  ;;  %187 = vrot.lane.b32.xlu0 (%p384_p9), %v183_v1, %s514_s30 }
  0x37   : > { %v204_v5 = vsub.f32 (%p384_p9), %v184_v2, %v199_v4  ;;  %v200_v6 = vsel (%p384_p9), %vm197_vm2, %v198_v3, %v199_v4 }
  0x38   : > { %v203_v7 = vsub.f32 (%p384_p9), %v183_v1, %v200_v6 }
  0x39   : > { %v206_v8 = vand.u32 (%p384_p9), 2147483647, %v204_v5 }
  0x3a   : > { %189 = vrot.lane.b32.xlu0 (%p384_p9), %v184_v2, %s514_s30  ;;  %v205_v9 = vand.u32 (%p384_p9), 2147483647, %v203_v7 }
  0x3b   : > { %v224_v10 = vsel (%p384_p9), %vm223_vm3, %v206_v8, 0.0 }
  0x3c   : > { %v222_v11 = vsel %vm221_vm4, %v205_v9, 0.0  ;;  %v207_v35 = vld [vmem:[%s632_s27] sm:$0x1] }
  0x3d   : > { %v225_v12 = vadd.f32 %v224_v10, %v222_v11  ;;  %v220_v18 = vld [vmem:[%s637_s29] sm:$0x1] }
  0x3f   : > { %v226_v13 = vrot.slane %v225_v12, 4 }
  0x41   : > { %v227_v14 = vadd.f32 %v226_v13, %v225_v12 }
  0x43   : > { %v228_v15 = vrot.slane %v227_v14, 2 }
  0x45   : > { %v229_v16 = vadd.f32 %v228_v15, %v227_v14 }
  0x47   : > { %v230_v17 = vrot.slane %v229_v16, 1 }
  0x49   : > { %v231_v19 = vadd.f32 %v230_v17, %v229_v16 }
  0x4b   : > { %v232_v20 = vadd.f32 %v231_v19, %v220_v18 }
  0x4d   : > { %233 = vst.msk [vmem:[%s637_s29] sm:$0x1] %vm177_vm1, %v232_v20 }
  0xa8   : > { %v188_v21 = vpop.permute.xlu0 %187 }
  0xa9   : > { %v193_v22 = vsub.f32 %v183_v1, %v188_v21 }
  0xab   : > { %v195_v24 = vand.u32 2147483647, %v193_v22 }
  0xac   : > { %v190_v23 = vpop.permute.xlu0 %189 }
  0xad   : > { %v194_v25 = vsub.f32 %v184_v2, %v190_v23  ;;  %v209_v27 = vsel %vm208_vm5, %v195_v24, 0.0 }
  0xaf   : > { %v196_v26 = vand.u32 2147483647, %v194_v25 }
  0xb1   : > { %v210_v28 = vsel %vm208_vm5, %v196_v26, 0.0 }
  0xb2   : > { %v211_v29 = vadd.f32 %v210_v28, %v209_v27 }
  0xb4   : > { %v212_v30 = vrot.slane %v211_v29, 4 }
  0xb6   : > { %v213_v31 = vadd.f32 %v212_v30, %v211_v29 }
  0xb8   : > { %v214_v32 = vrot.slane %v213_v31, 2 }
  0xba   : > { %v215_v33 = vadd.f32 %v214_v32, %v213_v31 }
  0xbc   : > { %v216_v34 = vrot.slane %v215_v33, 1 }
  0xbe   : > { %v217_v36 = vadd.f32 %v216_v34, %v215_v33 }
  0xc0   : > { %v218_v37 = vadd.f32 %v217_v36, %v207_v35 }
  0xc2   : > { %219 = vst.msk [vmem:[%s632_s27] sm:$0x1] %vm175_vm0, %v218_v37 }
  0xc3 PF: > { %p388_p7 = scmp.gt.s32.totalorder %s625_s12, 1 }
  0xc4   : > { %v392_v38 = vld [vmem:[%s617_s23 + $0x10] sm:$0xff] (%p388_p7)  ;;  %v393_v39 = vld [vmem:[%s617_s23 + $0x18] sm:$0xff] (%p388_p7)  ;;  %vm253_vm6 = vcmask (%p388_p7), 1046528   ;;  %s515_s13 = smov (%p388_p7), 127   ;;  %vm279_vm7 = vcmask (%p388_p7), 129024   ;;  %vm277_vm8 = vcmask (%p388_p7), 130048  }
  0xc5   : > { %237 = sbr.rel (!%p388_p7) target bundleno = 338 (0x152), region = 36  ;;  %243 = vrot.lane.b32.xlu0 (%p388_p7), %v392_v38, %s515_s13  ;;  %v254_v40 = vrot.slane (%p388_p7), %v392_v38, 1  ;;  %v255_v41 = vrot.slane (%p388_p7), %v393_v39, 1  ;;  %v276_v55 = vld [vmem:[%s637_s29] sm:$0x1] (%p388_p7)  ;;  %vm264_vm9 = vcmask (%p388_p7), 121856  }
  0xc7   : > { %v260_v42 = vsub.f32 (%p388_p7), %v393_v39, %v255_v41  ;;  %v256_v43 = vsel (%p388_p7), %vm253_vm6, %v254_v40, %v255_v41 }
  0xc8   : > { %v259_v44 = vsub.f32 (%p388_p7), %v392_v38, %v256_v43 }
  0xc9   : > { %v262_v45 = vand.u32 (%p388_p7), 2147483647, %v260_v42  ;;  %245 = vrot.lane.b32.xlu0 (%p388_p7), %v393_v39, %s515_s13  ;;  %v263_v8 = vld [vmem:[%s632_s27] sm:$0x1] (%p388_p7) }
  0xca   : > { %v261_v46 = vand.u32 (%p388_p7), 2147483647, %v259_v44 }
  0xcb   : > { %v280_v47 = vsel (%p388_p7), %vm279_vm7, %v262_v45, 0.0 }
  0xcc   : > { %v278_v48 = vsel %vm277_vm8, %v261_v46, 0.0 }
  0xcd   : > { %v281_v49 = vadd.f32 %v280_v47, %v278_v48 }
  0xcf   : > { %v282_v50 = vrot.slane %v281_v49, 4 }
  0xd1   : > { %v283_v51 = vadd.f32 %v282_v50, %v281_v49 }
  0xd3   : > { %v284_v52 = vrot.slane %v283_v51, 2 }
  0xd5   : > { %v285_v53 = vadd.f32 %v284_v52, %v283_v51 }
  0xd7   : > { %v286_v54 = vrot.slane %v285_v53, 1 }
  0xd9   : > { %v287_v56 = vadd.f32 %v286_v54, %v285_v53 }
  0xdb   : > { %v288_v57 = vadd.f32 %v287_v56, %v276_v55 }
  0xdd   : > { %289 = vst.msk [vmem:[%s637_s29] sm:$0x1] %vm177_vm1, %v288_v57 }
 0x137   : > { %v244_v58 = vpop.permute.xlu0 %243 }
 0x138   : > { %v249_v59 = vsub.f32 %v392_v38, %v244_v58 }
 0x13a   : > { %v251_v61 = vand.u32 2147483647, %v249_v59 }
 0x13b   : > { %v246_v60 = vpop.permute.xlu0 %245 }
 0x13c   : > { %v250_v62 = vsub.f32 %v393_v39, %v246_v60  ;;  %v265_v0 = vsel %vm264_vm9, %v251_v61, 0.0 }
 0x13e   : > { %v252_v63 = vand.u32 2147483647, %v250_v62 }
 0x140   : > { %v266_v1 = vsel %vm264_vm9, %v252_v63, 0.0 }
 0x141   : > { %v267_v2 = vadd.f32 %v266_v1, %v265_v0 }
 0x143   : > { %v268_v3 = vrot.slane %v267_v2, 4 }
 0x145   : > { %v269_v4 = vadd.f32 %v268_v3, %v267_v2 }
 0x147   : > { %v270_v5 = vrot.slane %v269_v4, 2 }
 0x149   : > { %v271_v6 = vadd.f32 %v270_v5, %v269_v4 }
 0x14b   : > { %v272_v7 = vrot.slane %v271_v6, 1 }
 0x14d   : > { %v273_v9 = vadd.f32 %v272_v7, %v271_v6 }
 0x14f   : > { %v274_v10 = vadd.f32 %v273_v9, %v263_v8 }
 0x151   : > { %275 = vst.msk [vmem:[%s632_s27] sm:$0x1] %vm175_vm0, %v274_v10 }
 0x152 PF: > { %p13_p4 = scmp.ge.s32.totalorder %s553_s14, 6   ;;  %s679_s9 = smov %s500_s10 }
 0x153   : > { %s680_s10 = smov %s504_s11  ;;  %s681_s11 = smov %s563_s17 }
 0x154   : > { %s682_s12 = smov %s553_s14  ;;  %15 = sbr.rel (!%p13_p4) target bundleno = 3 (0x3), region = 85 }
 0x15b   :  { %319 = vsyncpa [#allocation3], 1 }
 0x15c   :  { %321 = vsyncpa [#allocation3 + $0x1], 1 }

</bundles_post_ra>
